<compile_context>
chip_gen: v7x
topology: tpu7x:2x2x1
jax: 0.10.0
libtpu: 0.0.40
codegen_flags: <defaults>
</compile_context>

<pallas_src>
import functools

import jax
import jax.numpy as jnp
from jax.experimental import pallas as pl
from jax.experimental.pallas import tpu as pltpu

# ---- hyper-parameters (small, consistent with the module's __init__) --------
VOCAB = 50          # vocab_size
VOCAB_PAD = 64      # vocab padded to a sublane-friendly size for the one-hot
EMB = 32            # embeds_size
BLOCK = 16          # block_size (max positions)
NUM_CLASSES = 8     # num_classes
NUM_HEADS = 8       # nn.MultiheadAttention(num_heads=8)
HEAD_DIM = EMB // NUM_HEADS
DROP_PROB = 0.1     # dropout prob (identity at inference)
LN_EPS = 1e-5
NEG_SLOPE = 0.01    # LeakyReLU default negative_slope

B = 2               # batch
T = 8               # sequence length (<= BLOCK)


# =============================================================================
# Fused kernel: embedding + TransformerBlock + mean(dim=1) + classifier head.
# Activation layout: x2d[i*T + t, :] = embedded[i, t, :]  -> (B*T, E).
# =============================================================================
def fused_kernel(
    seq_ref,                       # (B*T, 1) int32 token ids
    tok_ref,                       # (VOCAB_PAD, E) token embedding table
    pos_ref,                       # (BLOCK, E)     positional embedding table
    in_wt_ref, in_b_ref,           # (E, 3E), (1, 3E)   attention in_proj
    out_wt_ref, out_b_ref,         # (E, E),  (1, E)    attention out_proj
    ln1_w_ref, ln1_b_ref,          # (1, E), (1, E)
    ff1_wt_ref, ff1_b_ref,         # (E, 4E), (1, 4E)
    ff2_wt_ref, ff2_b_ref,         # (4E, E), (1, E)
    ln2_w_ref, ln2_b_ref,          # (1, E), (1, E)
    seg_ref, seg_t_ref,            # (E, H) segment-sum, (H, E) segment-bcast
    w1t_ref, b1_ref,               # classifier
    w2t_ref, b2_ref,
    w3t_ref, b3_ref,
    out_ref,                       # (B, NUM_CLASSES) probabilities
    *, batch, seqlen, vocab_pad,
):
    E = EMB
    Bb = batch
    Tt = seqlen
    n = Bb * Tt

    # ---- token + positional embedding (one-hot MXU gather) ------------------
    ids = seq_ref[...]                                        # (n, 1) int32
    vocab_iota = jax.lax.broadcasted_iota(jnp.int32, (n, vocab_pad), 1)
    onehot = jnp.where(vocab_iota == ids, 1.0, 0.0)           # (n, VOCAB_PAD)
    pos = pos_ref[0:Tt, :]                                    # (T, E) static slice
    pos_full = jnp.concatenate([pos] * Bb, axis=0)            # (n, E)
    x = jnp.dot(onehot, tok_ref[...],
                preferred_element_type=jnp.float32) + pos_full  # (B*T, E)

    # ---- QKV projection: one matmul for all positions & batch elements -----
    qkv = jnp.dot(x, in_wt_ref[...],
                  preferred_element_type=jnp.float32) + in_b_ref[...]
    scale = 1.0 / float(HEAD_DIM) ** 0.5
    q = qkv[:, :E] * scale
    k = qkv[:, E:2 * E]
    v = qkv[:, 2 * E:]

    # ---- multi-head attention over the batch axis (L = B), all T at once ---
    # Per-(query i, key j) elementwise products stacked along the sublane axis.
    prods = []
    for i in range(Bb):
        qi = q[i * Tt:(i + 1) * Tt]                           # (T, E)
        for j in range(Bb):
            prods.append(qi * k[j * Tt:(j + 1) * Tt])
    pmat = jnp.concatenate(prods, axis=0)                     # (B*B*T, E)

    # Per-head scores via one segment-sum matmul: s[r, h] = sum_{e in head h}.
    s = jnp.dot(pmat, seg_ref[...],
                preferred_element_type=jnp.float32)           # (B*B*T, H)

    # Softmax over the key index j (per query i, per head) — pure VPU.
    prob_blocks = []
    for i in range(Bb):
        blk = [s[(i * Bb + j) * Tt:(i * Bb + j + 1) * Tt] for j in range(Bb)]
        m = blk[0]
        for bb in blk[1:]:
            m = jnp.maximum(m, bb)
        ex = [jnp.exp(bb - m) for bb in blk]
        den = ex[0]
        for e_ in ex[1:]:
            den = den + e_
        inv = 1.0 / den
        prob_blocks.extend([e_ * inv for e_ in ex])
    pm = jnp.concatenate(prob_blocks, axis=0)                 # (B*B*T, H)

    # Broadcast each head's probability across its HEAD_DIM lanes (one matmul).
    pexp = jnp.dot(pm, seg_t_ref[...],
                   preferred_element_type=jnp.float32)        # (B*B*T, E)

    # Context: ctx_i = sum_j p[i, j] * v_j  (elementwise, per head-lane).
    ctxs = []
    for i in range(Bb):
        ctx = pexp[(i * Bb) * Tt:(i * Bb + 1) * Tt] * v[0:Tt]
        for j in range(1, Bb):
            ctx = ctx + (pexp[(i * Bb + j) * Tt:(i * Bb + j + 1) * Tt]
                         * v[j * Tt:(j + 1) * Tt])
        ctxs.append(ctx)
    attn = jnp.concatenate(ctxs, axis=0)                      # (B*T, E)

    attended = jnp.dot(attn, out_wt_ref[...],
                       preferred_element_type=jnp.float32) + out_b_ref[...]

    # ---- one-pass LayerNorm -------------------------------------------------
    def layer_norm(y, w, b):
        mu = jnp.mean(y, axis=-1, keepdims=True)
        ms = jnp.mean(y * y, axis=-1, keepdims=True)
        var = ms - mu * mu
        return (y - mu) * jax.lax.rsqrt(var + LN_EPS) * w + b

    y = layer_norm(x + attended, ln1_w_ref[...], ln1_b_ref[...])

    # ---- feed-forward: Linear(E,4E) -> ReLU -> Linear(4E,E) -----------------
    h1 = jnp.maximum(
        jnp.dot(y, ff1_wt_ref[...],
                preferred_element_type=jnp.float32) + ff1_b_ref[...], 0.0)
    ff = jnp.dot(h1, ff2_wt_ref[...],
                 preferred_element_type=jnp.float32) + ff2_b_ref[...]
    y = layer_norm(y + ff, ln2_w_ref[...], ln2_b_ref[...])

    # ---- mean over torch dim=1 (the T rows of each batch element) -----------
    pooled_rows = [jnp.mean(y[i * Tt:(i + 1) * Tt], axis=0, keepdims=True)
                   for i in range(Bb)]
    pooled = jnp.concatenate(pooled_rows, axis=0)             # (B, E)

    # ---- classifier head -----------------------------------------------------
    def leaky(z):
        return jnp.where(z > 0, z, NEG_SLOPE * z)

    h = leaky(jnp.dot(pooled, w1t_ref[...],
                      preferred_element_type=jnp.float32) + b1_ref[...])
    # TODO(synk): torch.nn.Dropout is the identity at inference time; the
    # train-mode RNG masking is not reproduced here.
    h = leaky(jnp.dot(h, w2t_ref[...],
                      preferred_element_type=jnp.float32) + b2_ref[...])
    logits = jnp.dot(h, w3t_ref[...],
                     preferred_element_type=jnp.float32) + b3_ref[...]
    z = logits - jnp.max(logits, axis=-1, keepdims=True)
    e = jnp.exp(z)
    out_ref[...] = e / jnp.sum(e, axis=-1, keepdims=True)


# =============================================================================
# One-time parameter preparation (transposes / bias reshapes / vocab padding
# hoisted out of the hot path), plus the per-head segment matrices.
# =============================================================================
def prepare_params(params):
    f32 = lambda a: a.astype(jnp.float32)
    seg = (jnp.arange(EMB)[:, None] // HEAD_DIM
           == jnp.arange(NUM_HEADS)[None, :]).astype(jnp.float32)   # (E, H)
    tok_pad = jnp.zeros((VOCAB_PAD, EMB), jnp.float32)
    tok_pad = tok_pad.at[:VOCAB, :].set(f32(params['tok_embs']))
    return {
        'tok_pad': tok_pad,
        'pos_embs': f32(params['pos_embs']),
        'in_wt': f32(params['in_proj_w']).T, 'in_b': f32(params['in_proj_b'])[None, :],
        'out_wt': f32(params['out_proj_w']).T, 'out_b': f32(params['out_proj_b'])[None, :],
        'ln1_w': f32(params['ln1_w'])[None, :], 'ln1_b': f32(params['ln1_b'])[None, :],
        'ff1_wt': f32(params['ff1_w']).T, 'ff1_b': f32(params['ff1_b'])[None, :],
        'ff2_wt': f32(params['ff2_w']).T, 'ff2_b': f32(params['ff2_b'])[None, :],
        'ln2_w': f32(params['ln2_w'])[None, :], 'ln2_b': f32(params['ln2_b'])[None, :],
        'cls_w1t': f32(params['cls_w1']).T, 'cls_b1': f32(params['cls_b1'])[None, :],
        'cls_w2t': f32(params['cls_w2']).T, 'cls_b2': f32(params['cls_b2'])[None, :],
        'cls_w3t': f32(params['cls_w3']).T, 'cls_b3': f32(params['cls_b3'])[None, :],
        'seg': seg, 'seg_t': seg.T,
    }


# =============================================================================
# Wrapper: single fused pallas_call (only a trivial id reshape stays outside).
# =============================================================================
@jax.jit
def transformer_forward(seq, prep):
    B_, T_ = seq.shape
    seq2d = seq.reshape(B_ * T_, 1).astype(jnp.int32)

    vmem = pl.BlockSpec(memory_space=pltpu.MemorySpace.VMEM)
    kern = functools.partial(fused_kernel, batch=B_, seqlen=T_,
                             vocab_pad=VOCAB_PAD)

    probs = pl.pallas_call(
        kern,
        out_shape=jax.ShapeDtypeStruct((B_, NUM_CLASSES), jnp.float32),
        in_specs=[vmem] * 23,
        out_specs=vmem,
    )(seq2d,
      prep['tok_pad'], prep['pos_embs'],
      prep['in_wt'], prep['in_b'],
      prep['out_wt'], prep['out_b'],
      prep['ln1_w'], prep['ln1_b'],
      prep['ff1_wt'], prep['ff1_b'],
      prep['ff2_wt'], prep['ff2_b'],
      prep['ln2_w'], prep['ln2_b'],
      prep['seg'], prep['seg_t'],
      prep['cls_w1t'], prep['cls_b1'],
      prep['cls_w2t'], prep['cls_b2'],
      prep['cls_w3t'], prep['cls_b3'])
    return probs


# ---- deterministic parameter init (shapes follow the PyTorch __init__) ------
def init_params(key):
    ks = iter(jax.random.split(key, 24))

    def w(shape, scale=0.02):
        return (scale * jax.random.normal(next(ks), shape)).astype(jnp.float32)

    p = {
        'tok_embs': w((VOCAB, EMB)),
        'pos_embs': w((BLOCK, EMB)),
        # TransformerBlock.attention (nn.MultiheadAttention)
        'in_proj_w': w((3 * EMB, EMB)), 'in_proj_b': w((3 * EMB,)),
        'out_proj_w': w((EMB, EMB)),    'out_proj_b': w((EMB,)),
        # TransformerBlock layer norms
        'ln1_w': jnp.ones((EMB,), jnp.float32), 'ln1_b': jnp.zeros((EMB,), jnp.float32),
        'ln2_w': jnp.ones((EMB,), jnp.float32), 'ln2_b': jnp.zeros((EMB,), jnp.float32),
        # TransformerBlock feed-forward
        'ff1_w': w((4 * EMB, EMB)), 'ff1_b': w((4 * EMB,)),
        'ff2_w': w((EMB, 4 * EMB)), 'ff2_b': w((EMB,)),
        # classifier head
        'cls_w1': w((EMB, EMB)), 'cls_b1': w((EMB,)),
        'cls_w2': w((EMB, EMB)), 'cls_b2': w((EMB,)),
        'cls_w3': w((NUM_CLASSES, EMB)), 'cls_b3': w((NUM_CLASSES,)),
        # NOTE: Transformer.ln1 / Transformer.ln2 exist in __init__ but are
        # never used in forward(), so they are omitted here.
    }
    return p


# ---- pure-JAX reference (same math) for a sanity check ----------------------
def reference_forward(seq, params):
    B_, T_ = seq.shape
    E, H, hd = EMB, NUM_HEADS, HEAD_DIM
    x = params['tok_embs'][seq] + params['pos_embs'][jnp.arange(T_)]      # (B, T, E)
    qkv = jnp.einsum('bte,fe->btf', x, params['in_proj_w']) + params['in_proj_b']
    q, k, v = qkv[..., :E], qkv[..., E:2 * E], qkv[..., 2 * E:]
    qh = q.reshape(B_, T_, H, hd)
    kh = k.reshape(B_, T_, H, hd)
    vh = v.reshape(B_, T_, H, hd)
    # attention over the batch axis (batch_first=False semantics)
    s = jnp.einsum('bthd,cthd->thbc', qh, kh) / jnp.sqrt(float(hd))
    p = jax.nn.softmax(s, axis=-1)
    o = jnp.einsum('thbc,cthd->bthd', p, vh).reshape(B_, T_, E)
    attended = jnp.einsum('bte,fe->btf', o, params['out_proj_w']) + params['out_proj_b']

    def ln(y, wt, bt):
        mu = y.mean(-1, keepdims=True)
        var = ((y - mu) ** 2).mean(-1, keepdims=True)
        return (y - mu) / jnp.sqrt(var + LN_EPS) * wt + bt

    x = ln(x + attended, params['ln1_w'], params['ln1_b'])
    h = jax.nn.relu(jnp.einsum('bte,fe->btf', x, params['ff1_w']) + params['ff1_b'])
    ff = jnp.einsum('btf,ef->bte', h, params['ff2_w']) + params['ff2_b']
    x = ln(x + ff, params['ln2_w'], params['ln2_b'])
    pooled = x.mean(axis=1)

    def leaky(z):
        return jnp.where(z > 0, z, NEG_SLOPE * z)

    h = leaky(pooled @ params['cls_w1'].T + params['cls_b1'])
    h = leaky(h @ params['cls_w2'].T + params['cls_b2'])
    logits = h @ params['cls_w3'].T + params['cls_b3']
    return jax.nn.softmax(logits, axis=1)


if __name__ == "__main__":
    key = jax.random.PRNGKey(0)
    pkey, skey = jax.random.split(key)
    params = init_params(pkey)
    prep = prepare_params(params)
    seq = jax.random.randint(skey, (B, T), 0, VOCAB, dtype=jnp.int32)

    out = transformer_forward(seq, prep)
    out = jax.block_until_ready(out)

    ref = reference_forward(seq, params)
    assert out.shape == (B, NUM_CLASSES)
    assert bool(jnp.allclose(out, ref, atol=2e-3, rtol=2e-2)), (out, ref)
    print("KERNEL_OK")
</pallas_src>

<mosaic_0001>
module attributes {stable_mosaic.version = 11 : i64} {
  func.func @fused_kernel(%arg0: memref<16x1xi32, #tpu.memory_space<vmem>>, %arg1: memref<64x32xf32, #tpu.memory_space<vmem>>, %arg2: memref<16x32xf32, #tpu.memory_space<vmem>>, %arg3: memref<32x96xf32, #tpu.memory_space<vmem>>, %arg4: memref<1x96xf32, #tpu.memory_space<vmem>>, %arg5: memref<32x32xf32, #tpu.memory_space<vmem>>, %arg6: memref<1x32xf32, #tpu.memory_space<vmem>>, %arg7: memref<1x32xf32, #tpu.memory_space<vmem>>, %arg8: memref<1x32xf32, #tpu.memory_space<vmem>>, %arg9: memref<32x128xf32, #tpu.memory_space<vmem>>, %arg10: memref<1x128xf32, #tpu.memory_space<vmem>>, %arg11: memref<128x32xf32, #tpu.memory_space<vmem>>, %arg12: memref<1x32xf32, #tpu.memory_space<vmem>>, %arg13: memref<1x32xf32, #tpu.memory_space<vmem>>, %arg14: memref<1x32xf32, #tpu.memory_space<vmem>>, %arg15: memref<32x8xf32, #tpu.memory_space<vmem>>, %arg16: memref<8x32xf32, #tpu.memory_space<vmem>>, %arg17: memref<32x32xf32, #tpu.memory_space<vmem>>, %arg18: memref<1x32xf32, #tpu.memory_space<vmem>>, %arg19: memref<32x32xf32, #tpu.memory_space<vmem>>, %arg20: memref<1x32xf32, #tpu.memory_space<vmem>>, %arg21: memref<32x8xf32, #tpu.memory_space<vmem>>, %arg22: memref<1x8xf32, #tpu.memory_space<vmem>>, %arg23: memref<2x8xf32, #tpu.memory_space<vmem>>) attributes {dimension_semantics = [], scalar_prefetch = 0 : i64, scratch_operands = 0 : i64, tpu.core_type = #tpu.core_type<tc>} {
    %c0 = arith.constant 0 : index
    %c0_0 = arith.constant 0 : index
    %0 = vector.load %arg0[%c0, %c0_0] : memref<16x1xi32, #tpu.memory_space<vmem>>, vector<16x1xi32>
    %1 = tpu.iota {dimensions = array<i32: 1>} : vector<16x64xi32>
    %2 = vector.broadcast %0 : vector<16x1xi32> to vector<16x64xi32>
    %3 = arith.cmpi eq, %1, %2 : vector<16x64xi32>
    %cst = arith.constant 1.000000e+00 : f32
    %cst_1 = arith.constant 0.000000e+00 : f32
    %4 = vector.broadcast %cst : f32 to vector<16x64xf32>
    %5 = vector.broadcast %cst_1 : f32 to vector<16x64xf32>
    %6 = arith.select %3, %4, %5 : vector<16x64xi1>, vector<16x64xf32>
    %c0_2 = arith.constant 0 : index
    %c0_3 = arith.constant 0 : index
    %7 = vector.load %arg2[%c0_2, %c0_3] : memref<16x32xf32, #tpu.memory_space<vmem>>, vector<8x32xf32>
    %8 = tpu.concatenate %7, %7 in 0 : vector<8x32xf32>, vector<8x32xf32> -> vector<16x32xf32>
    %c0_4 = arith.constant 0 : index
    %c0_5 = arith.constant 0 : index
    %9 = vector.load %arg1[%c0_4, %c0_5] : memref<64x32xf32, #tpu.memory_space<vmem>>, vector<64x32xf32>
    %cst_6 = arith.constant dense<0.000000e+00> : vector<16x32xf32>
    %10 = tpu.matmul %6, %9, %cst_6 {dimension_numbers = #tpu.dot_dimension_numbers<[1], [0], [0], [1], [0, 0, 1, 1], [], []>} : vector<16x64xf32>, vector<64x32xf32>, vector<16x32xf32> -> vector<16x32xf32>
    %11 = arith.addf %10, %8 : vector<16x32xf32>
    %c0_7 = arith.constant 0 : index
    %c0_8 = arith.constant 0 : index
    %12 = vector.load %arg3[%c0_7, %c0_8] : memref<32x96xf32, #tpu.memory_space<vmem>>, vector<32x96xf32>
    %cst_9 = arith.constant dense<0.000000e+00> : vector<16x96xf32>
    %13 = tpu.matmul %11, %12, %cst_9 {dimension_numbers = #tpu.dot_dimension_numbers<[1], [0], [0], [1], [0, 0, 1, 1], [], []>} : vector<16x32xf32>, vector<32x96xf32>, vector<16x96xf32> -> vector<16x96xf32>
    %c0_10 = arith.constant 0 : index
    %c0_11 = arith.constant 0 : index
    %14 = vector.load %arg4[%c0_10, %c0_11] : memref<1x96xf32, #tpu.memory_space<vmem>>, vector<1x96xf32>
    %15 = vector.broadcast %14 : vector<1x96xf32> to vector<16x96xf32>
    %16 = arith.addf %13, %15 : vector<16x96xf32>
    %17 = vector.extract_strided_slice %16 {offsets = [0, 0], sizes = [16, 32], strides = [1, 1]} : vector<16x96xf32> to vector<16x32xf32>
    %cst_12 = arith.constant 5.000000e-01 : f32
    %18 = vector.broadcast %cst_12 : f32 to vector<16x32xf32>
    %19 = arith.mulf %17, %18 : vector<16x32xf32>
    %20 = vector.extract_strided_slice %16 {offsets = [0, 32], sizes = [16, 32], strides = [1, 1]} : vector<16x96xf32> to vector<16x32xf32>
    %21 = vector.extract_strided_slice %16 {offsets = [0, 64], sizes = [16, 32], strides = [1, 1]} : vector<16x96xf32> to vector<16x32xf32>
    %22 = vector.extract_strided_slice %19 {offsets = [0, 0], sizes = [8, 32], strides = [1, 1]} : vector<16x32xf32> to vector<8x32xf32>
    %23 = vector.extract_strided_slice %20 {offsets = [0, 0], sizes = [8, 32], strides = [1, 1]} : vector<16x32xf32> to vector<8x32xf32>
    %24 = arith.mulf %22, %23 : vector<8x32xf32>
    %25 = vector.extract_strided_slice %20 {offsets = [8, 0], sizes = [8, 32], strides = [1, 1]} : vector<16x32xf32> to vector<8x32xf32>
    %26 = arith.mulf %22, %25 : vector<8x32xf32>
    %27 = vector.extract_strided_slice %19 {offsets = [8, 0], sizes = [8, 32], strides = [1, 1]} : vector<16x32xf32> to vector<8x32xf32>
    %28 = vector.extract_strided_slice %20 {offsets = [0, 0], sizes = [8, 32], strides = [1, 1]} : vector<16x32xf32> to vector<8x32xf32>
    %29 = arith.mulf %27, %28 : vector<8x32xf32>
    %30 = vector.extract_strided_slice %20 {offsets = [8, 0], sizes = [8, 32], strides = [1, 1]} : vector<16x32xf32> to vector<8x32xf32>
    %31 = arith.mulf %27, %30 : vector<8x32xf32>
    %32 = tpu.concatenate %24, %26, %29, %31 in 0 : vector<8x32xf32>, vector<8x32xf32>, vector<8x32xf32>, vector<8x32xf32> -> vector<32x32xf32>
    %c0_13 = arith.constant 0 : index
    %c0_14 = arith.constant 0 : index
    %33 = vector.load %arg15[%c0_13, %c0_14] : memref<32x8xf32, #tpu.memory_space<vmem>>, vector<32x8xf32>
    %cst_15 = arith.constant dense<0.000000e+00> : vector<32x8xf32>
    %34 = tpu.matmul %32, %33, %cst_15 {dimension_numbers = #tpu.dot_dimension_numbers<[1], [0], [0], [1], [0, 0, 1, 1], [], []>} : vector<32x32xf32>, vector<32x8xf32>, vector<32x8xf32> -> vector<32x8xf32>
    %35 = vector.extract_strided_slice %34 {offsets = [0, 0], sizes = [8, 8], strides = [1, 1]} : vector<32x8xf32> to vector<8x8xf32>
    %36 = vector.extract_strided_slice %34 {offsets = [8, 0], sizes = [8, 8], strides = [1, 1]} : vector<32x8xf32> to vector<8x8xf32>
    %37 = arith.maximumf %35, %36 : vector<8x8xf32>
    %38 = arith.subf %35, %37 : vector<8x8xf32>
    %39 = math.exp %38 : vector<8x8xf32>
    %40 = arith.subf %36, %37 : vector<8x8xf32>
    %41 = math.exp %40 : vector<8x8xf32>
    %42 = arith.addf %39, %41 : vector<8x8xf32>
    %cst_16 = arith.constant 1.000000e+00 : f32
    %43 = vector.broadcast %cst_16 : f32 to vector<8x8xf32>
    %44 = arith.divf %43, %42 : vector<8x8xf32>
    %45 = arith.mulf %39, %44 : vector<8x8xf32>
    %46 = arith.mulf %41, %44 : vector<8x8xf32>
    %47 = vector.extract_strided_slice %34 {offsets = [16, 0], sizes = [8, 8], strides = [1, 1]} : vector<32x8xf32> to vector<8x8xf32>
    %48 = vector.extract_strided_slice %34 {offsets = [24, 0], sizes = [8, 8], strides = [1, 1]} : vector<32x8xf32> to vector<8x8xf32>
    %49 = arith.maximumf %47, %48 : vector<8x8xf32>
    %50 = arith.subf %47, %49 : vector<8x8xf32>
    %51 = math.exp %50 : vector<8x8xf32>
    %52 = arith.subf %48, %49 : vector<8x8xf32>
    %53 = math.exp %52 : vector<8x8xf32>
    %54 = arith.addf %51, %53 : vector<8x8xf32>
    %cst_17 = arith.constant 1.000000e+00 : f32
    %55 = vector.broadcast %cst_17 : f32 to vector<8x8xf32>
    %56 = arith.divf %55, %54 : vector<8x8xf32>
    %57 = arith.mulf %51, %56 : vector<8x8xf32>
    %58 = arith.mulf %53, %56 : vector<8x8xf32>
    %59 = tpu.concatenate %45, %46, %57, %58 in 0 : vector<8x8xf32>, vector<8x8xf32>, vector<8x8xf32>, vector<8x8xf32> -> vector<32x8xf32>
    %c0_18 = arith.constant 0 : index
    %c0_19 = arith.constant 0 : index
    %60 = vector.load %arg16[%c0_18, %c0_19] : memref<8x32xf32, #tpu.memory_space<vmem>>, vector<8x32xf32>
    %cst_20 = arith.constant dense<0.000000e+00> : vector<32x32xf32>
    %61 = tpu.matmul %59, %60, %cst_20 {dimension_numbers = #tpu.dot_dimension_numbers<[1], [0], [0], [1], [0, 0, 1, 1], [], []>} : vector<32x8xf32>, vector<8x32xf32>, vector<32x32xf32> -> vector<32x32xf32>
    %62 = vector.extract_strided_slice %61 {offsets = [0, 0], sizes = [8, 32], strides = [1, 1]} : vector<32x32xf32> to vector<8x32xf32>
    %63 = vector.extract_strided_slice %21 {offsets = [0, 0], sizes = [8, 32], strides = [1, 1]} : vector<16x32xf32> to vector<8x32xf32>
    %64 = arith.mulf %62, %63 : vector<8x32xf32>
    %65 = vector.extract_strided_slice %61 {offsets = [8, 0], sizes = [8, 32], strides = [1, 1]} : vector<32x32xf32> to vector<8x32xf32>
    %66 = vector.extract_strided_slice %21 {offsets = [8, 0], sizes = [8, 32], strides = [1, 1]} : vector<16x32xf32> to vector<8x32xf32>
    %67 = arith.mulf %65, %66 : vector<8x32xf32>
    %68 = arith.addf %64, %67 : vector<8x32xf32>
    %69 = vector.extract_strided_slice %61 {offsets = [16, 0], sizes = [8, 32], strides = [1, 1]} : vector<32x32xf32> to vector<8x32xf32>
    %70 = vector.extract_strided_slice %21 {offsets = [0, 0], sizes = [8, 32], strides = [1, 1]} : vector<16x32xf32> to vector<8x32xf32>
    %71 = arith.mulf %69, %70 : vector<8x32xf32>
    %72 = vector.extract_strided_slice %61 {offsets = [24, 0], sizes = [8, 32], strides = [1, 1]} : vector<32x32xf32> to vector<8x32xf32>
    %73 = vector.extract_strided_slice %21 {offsets = [8, 0], sizes = [8, 32], strides = [1, 1]} : vector<16x32xf32> to vector<8x32xf32>
    %74 = arith.mulf %72, %73 : vector<8x32xf32>
    %75 = arith.addf %71, %74 : vector<8x32xf32>
    %76 = tpu.concatenate %68, %75 in 0 : vector<8x32xf32>, vector<8x32xf32> -> vector<16x32xf32>
    %c0_21 = arith.constant 0 : index
    %c0_22 = arith.constant 0 : index
    %77 = vector.load %arg5[%c0_21, %c0_22] : memref<32x32xf32, #tpu.memory_space<vmem>>, vector<32x32xf32>
    %cst_23 = arith.constant dense<0.000000e+00> : vector<16x32xf32>
    %78 = tpu.matmul %76, %77, %cst_23 {dimension_numbers = #tpu.dot_dimension_numbers<[1], [0], [0], [1], [0, 0, 1, 1], [], []>} : vector<16x32xf32>, vector<32x32xf32>, vector<16x32xf32> -> vector<16x32xf32>
    %c0_24 = arith.constant 0 : index
    %c0_25 = arith.constant 0 : index
    %79 = vector.load %arg6[%c0_24, %c0_25] : memref<1x32xf32, #tpu.memory_space<vmem>>, vector<1x32xf32>
    %80 = vector.broadcast %79 : vector<1x32xf32> to vector<16x32xf32>
    %81 = arith.addf %78, %80 : vector<16x32xf32>
    %82 = arith.addf %11, %81 : vector<16x32xf32>
    %c0_26 = arith.constant 0 : index
    %c0_27 = arith.constant 0 : index
    %83 = vector.load %arg7[%c0_26, %c0_27] : memref<1x32xf32, #tpu.memory_space<vmem>>, vector<1x32xf32>
    %c0_28 = arith.constant 0 : index
    %c0_29 = arith.constant 0 : index
    %84 = vector.load %arg8[%c0_28, %c0_29] : memref<1x32xf32, #tpu.memory_space<vmem>>, vector<1x32xf32>
    %cst_30 = arith.constant dense<0.000000e+00> : vector<16xf32>
    %85 = vector.multi_reduction <add>, %82, %cst_30 [1] : vector<16x32xf32> to vector<16xf32>
    %86 = vector.shape_cast %85 : vector<16xf32> to vector<16x1xf32>
    %cst_31 = arith.constant 3.200000e+01 : f32
    %87 = vector.broadcast %cst_31 : f32 to vector<16x1xf32>
    %88 = arith.divf %86, %87 : vector<16x1xf32>
    %89 = arith.mulf %82, %82 : vector<16x32xf32>
    %cst_32 = arith.constant dense<0.000000e+00> : vector<16xf32>
    %90 = vector.multi_reduction <add>, %89, %cst_32 [1] : vector<16x32xf32> to vector<16xf32>
    %91 = vector.shape_cast %90 : vector<16xf32> to vector<16x1xf32>
    %cst_33 = arith.constant 3.200000e+01 : f32
    %92 = vector.broadcast %cst_33 : f32 to vector<16x1xf32>
    %93 = arith.divf %91, %92 : vector<16x1xf32>
    %94 = arith.mulf %88, %88 : vector<16x1xf32>
    %95 = arith.subf %93, %94 : vector<16x1xf32>
    %96 = vector.broadcast %88 : vector<16x1xf32> to vector<16x32xf32>
    %97 = arith.subf %82, %96 : vector<16x32xf32>
    %cst_34 = arith.constant 9.99999974E-6 : f32
    %98 = vector.broadcast %cst_34 : f32 to vector<16x1xf32>
    %99 = arith.addf %95, %98 : vector<16x1xf32>
    %100 = math.rsqrt %99 : vector<16x1xf32>
    %101 = vector.broadcast %100 : vector<16x1xf32> to vector<16x32xf32>
    %102 = arith.mulf %97, %101 : vector<16x32xf32>
    %103 = vector.broadcast %83 : vector<1x32xf32> to vector<16x32xf32>
    %104 = arith.mulf %102, %103 : vector<16x32xf32>
    %105 = vector.broadcast %84 : vector<1x32xf32> to vector<16x32xf32>
    %106 = arith.addf %104, %105 : vector<16x32xf32>
    %c0_35 = arith.constant 0 : index
    %c0_36 = arith.constant 0 : index
    %107 = vector.load %arg9[%c0_35, %c0_36] : memref<32x128xf32, #tpu.memory_space<vmem>>, vector<32x128xf32>
    %cst_37 = arith.constant dense<0.000000e+00> : vector<16x128xf32>
    %108 = tpu.matmul %106, %107, %cst_37 {dimension_numbers = #tpu.dot_dimension_numbers<[1], [0], [0], [1], [0, 0, 1, 1], [], []>} : vector<16x32xf32>, vector<32x128xf32>, vector<16x128xf32> -> vector<16x128xf32>
    %c0_38 = arith.constant 0 : index
    %c0_39 = arith.constant 0 : index
    %109 = vector.load %arg10[%c0_38, %c0_39] : memref<1x128xf32, #tpu.memory_space<vmem>>, vector<1x128xf32>
    %110 = vector.broadcast %109 : vector<1x128xf32> to vector<16x128xf32>
    %111 = arith.addf %108, %110 : vector<16x128xf32>
    %cst_40 = arith.constant 0.000000e+00 : f32
    %112 = vector.broadcast %cst_40 : f32 to vector<16x128xf32>
    %113 = arith.maximumf %111, %112 : vector<16x128xf32>
    %c0_41 = arith.constant 0 : index
    %c0_42 = arith.constant 0 : index
    %114 = vector.load %arg11[%c0_41, %c0_42] : memref<128x32xf32, #tpu.memory_space<vmem>>, vector<128x32xf32>
    %cst_43 = arith.constant dense<0.000000e+00> : vector<16x32xf32>
    %115 = tpu.matmul %113, %114, %cst_43 {dimension_numbers = #tpu.dot_dimension_numbers<[1], [0], [0], [1], [0, 0, 1, 1], [], []>} : vector<16x128xf32>, vector<128x32xf32>, vector<16x32xf32> -> vector<16x32xf32>
    %c0_44 = arith.constant 0 : index
    %c0_45 = arith.constant 0 : index
    %116 = vector.load %arg12[%c0_44, %c0_45] : memref<1x32xf32, #tpu.memory_space<vmem>>, vector<1x32xf32>
    %117 = vector.broadcast %116 : vector<1x32xf32> to vector<16x32xf32>
    %118 = arith.addf %115, %117 : vector<16x32xf32>
    %119 = arith.addf %106, %118 : vector<16x32xf32>
    %c0_46 = arith.constant 0 : index
    %c0_47 = arith.constant 0 : index
    %120 = vector.load %arg13[%c0_46, %c0_47] : memref<1x32xf32, #tpu.memory_space<vmem>>, vector<1x32xf32>
    %c0_48 = arith.constant 0 : index
    %c0_49 = arith.constant 0 : index
    %121 = vector.load %arg14[%c0_48, %c0_49] : memref<1x32xf32, #tpu.memory_space<vmem>>, vector<1x32xf32>
    %cst_50 = arith.constant dense<0.000000e+00> : vector<16xf32>
    %122 = vector.multi_reduction <add>, %119, %cst_50 [1] : vector<16x32xf32> to vector<16xf32>
    %123 = vector.shape_cast %122 : vector<16xf32> to vector<16x1xf32>
    %cst_51 = arith.constant 3.200000e+01 : f32
    %124 = vector.broadcast %cst_51 : f32 to vector<16x1xf32>
    %125 = arith.divf %123, %124 : vector<16x1xf32>
    %126 = arith.mulf %119, %119 : vector<16x32xf32>
    %cst_52 = arith.constant dense<0.000000e+00> : vector<16xf32>
    %127 = vector.multi_reduction <add>, %126, %cst_52 [1] : vector<16x32xf32> to vector<16xf32>
    %128 = vector.shape_cast %127 : vector<16xf32> to vector<16x1xf32>
    %cst_53 = arith.constant 3.200000e+01 : f32
    %129 = vector.broadcast %cst_53 : f32 to vector<16x1xf32>
    %130 = arith.divf %128, %129 : vector<16x1xf32>
    %131 = arith.mulf %125, %125 : vector<16x1xf32>
    %132 = arith.subf %130, %131 : vector<16x1xf32>
    %133 = vector.broadcast %125 : vector<16x1xf32> to vector<16x32xf32>
    %134 = arith.subf %119, %133 : vector<16x32xf32>
    %cst_54 = arith.constant 9.99999974E-6 : f32
    %135 = vector.broadcast %cst_54 : f32 to vector<16x1xf32>
    %136 = arith.addf %132, %135 : vector<16x1xf32>
    %137 = math.rsqrt %136 : vector<16x1xf32>
    %138 = vector.broadcast %137 : vector<16x1xf32> to vector<16x32xf32>
    %139 = arith.mulf %134, %138 : vector<16x32xf32>
    %140 = vector.broadcast %120 : vector<1x32xf32> to vector<16x32xf32>
    %141 = arith.mulf %139, %140 : vector<16x32xf32>
    %142 = vector.broadcast %121 : vector<1x32xf32> to vector<16x32xf32>
    %143 = arith.addf %141, %142 : vector<16x32xf32>
    %144 = vector.extract_strided_slice %143 {offsets = [0, 0], sizes = [8, 32], strides = [1, 1]} : vector<16x32xf32> to vector<8x32xf32>
    %cst_55 = arith.constant dense<0.000000e+00> : vector<32xf32>
    %145 = vector.multi_reduction <add>, %144, %cst_55 [0] : vector<8x32xf32> to vector<32xf32>
    %146 = vector.shape_cast %145 : vector<32xf32> to vector<1x32xf32>
    %cst_56 = arith.constant 8.000000e+00 : f32
    %147 = vector.broadcast %cst_56 : f32 to vector<1x32xf32>
    %148 = arith.divf %146, %147 : vector<1x32xf32>
    %149 = vector.extract_strided_slice %143 {offsets = [8, 0], sizes = [8, 32], strides = [1, 1]} : vector<16x32xf32> to vector<8x32xf32>
    %cst_57 = arith.constant dense<0.000000e+00> : vector<32xf32>
    %150 = vector.multi_reduction <add>, %149, %cst_57 [0] : vector<8x32xf32> to vector<32xf32>
    %151 = vector.shape_cast %150 : vector<32xf32> to vector<1x32xf32>
    %cst_58 = arith.constant 8.000000e+00 : f32
    %152 = vector.broadcast %cst_58 : f32 to vector<1x32xf32>
    %153 = arith.divf %151, %152 : vector<1x32xf32>
    %154 = tpu.concatenate %148, %153 in 0 : vector<1x32xf32>, vector<1x32xf32> -> vector<2x32xf32>
    %c0_59 = arith.constant 0 : index
    %c0_60 = arith.constant 0 : index
    %155 = vector.load %arg17[%c0_59, %c0_60] : memref<32x32xf32, #tpu.memory_space<vmem>>, vector<32x32xf32>
    %cst_61 = arith.constant dense<0.000000e+00> : vector<2x32xf32>
    %156 = tpu.matmul %154, %155, %cst_61 {dimension_numbers = #tpu.dot_dimension_numbers<[1], [0], [0], [1], [0, 0, 1, 1], [], []>} : vector<2x32xf32>, vector<32x32xf32>, vector<2x32xf32> -> vector<2x32xf32>
    %c0_62 = arith.constant 0 : index
    %c0_63 = arith.constant 0 : index
    %157 = vector.load %arg18[%c0_62, %c0_63] : memref<1x32xf32, #tpu.memory_space<vmem>>, vector<1x32xf32>
    %158 = vector.broadcast %157 : vector<1x32xf32> to vector<2x32xf32>
    %159 = arith.addf %156, %158 : vector<2x32xf32>
    %cst_64 = arith.constant 0.000000e+00 : f32
    %160 = vector.broadcast %cst_64 : f32 to vector<2x32xf32>
    %161 = arith.cmpf ogt, %159, %160 : vector<2x32xf32>
    %cst_65 = arith.constant 0.00999999977 : f32
    %162 = vector.broadcast %cst_65 : f32 to vector<2x32xf32>
    %163 = arith.mulf %162, %159 : vector<2x32xf32>
    %164 = arith.select %161, %159, %163 : vector<2x32xi1>, vector<2x32xf32>
    %c0_66 = arith.constant 0 : index
    %c0_67 = arith.constant 0 : index
    %165 = vector.load %arg19[%c0_66, %c0_67] : memref<32x32xf32, #tpu.memory_space<vmem>>, vector<32x32xf32>
    %cst_68 = arith.constant dense<0.000000e+00> : vector<2x32xf32>
    %166 = tpu.matmul %164, %165, %cst_68 {dimension_numbers = #tpu.dot_dimension_numbers<[1], [0], [0], [1], [0, 0, 1, 1], [], []>} : vector<2x32xf32>, vector<32x32xf32>, vector<2x32xf32> -> vector<2x32xf32>
    %c0_69 = arith.constant 0 : index
    %c0_70 = arith.constant 0 : index
    %167 = vector.load %arg20[%c0_69, %c0_70] : memref<1x32xf32, #tpu.memory_space<vmem>>, vector<1x32xf32>
    %168 = vector.broadcast %167 : vector<1x32xf32> to vector<2x32xf32>
    %169 = arith.addf %166, %168 : vector<2x32xf32>
    %cst_71 = arith.constant 0.000000e+00 : f32
    %170 = vector.broadcast %cst_71 : f32 to vector<2x32xf32>
    %171 = arith.cmpf ogt, %169, %170 : vector<2x32xf32>
    %cst_72 = arith.constant 0.00999999977 : f32
    %172 = vector.broadcast %cst_72 : f32 to vector<2x32xf32>
    %173 = arith.mulf %172, %169 : vector<2x32xf32>
    %174 = arith.select %171, %169, %173 : vector<2x32xi1>, vector<2x32xf32>
    %c0_73 = arith.constant 0 : index
    %c0_74 = arith.constant 0 : index
    %175 = vector.load %arg21[%c0_73, %c0_74] : memref<32x8xf32, #tpu.memory_space<vmem>>, vector<32x8xf32>
    %cst_75 = arith.constant dense<0.000000e+00> : vector<2x8xf32>
    %176 = tpu.matmul %174, %175, %cst_75 {dimension_numbers = #tpu.dot_dimension_numbers<[1], [0], [0], [1], [0, 0, 1, 1], [], []>} : vector<2x32xf32>, vector<32x8xf32>, vector<2x8xf32> -> vector<2x8xf32>
    %c0_76 = arith.constant 0 : index
    %c0_77 = arith.constant 0 : index
    %177 = vector.load %arg22[%c0_76, %c0_77] : memref<1x8xf32, #tpu.memory_space<vmem>>, vector<1x8xf32>
    %178 = vector.broadcast %177 : vector<1x8xf32> to vector<2x8xf32>
    %179 = arith.addf %176, %178 : vector<2x8xf32>
    %cst_78 = arith.constant dense<0xFF800000> : vector<2xf32>
    %180 = vector.multi_reduction <maximumf>, %179, %cst_78 [1] : vector<2x8xf32> to vector<2xf32>
    %181 = vector.shape_cast %180 : vector<2xf32> to vector<2x1xf32>
    %182 = vector.broadcast %181 : vector<2x1xf32> to vector<2x8xf32>
    %183 = arith.subf %179, %182 : vector<2x8xf32>
    %184 = math.exp %183 : vector<2x8xf32>
    %cst_79 = arith.constant dense<0.000000e+00> : vector<2xf32>
    %185 = vector.multi_reduction <add>, %184, %cst_79 [1] : vector<2x8xf32> to vector<2xf32>
    %186 = vector.shape_cast %185 : vector<2xf32> to vector<2x1xf32>
    %187 = vector.broadcast %186 : vector<2x1xf32> to vector<2x8xf32>
    %188 = arith.divf %184, %187 : vector<2x8xf32>
    %c0_80 = arith.constant 0 : index
    %c0_81 = arith.constant 0 : index
    %189 = vector.load %arg23[%c0_80, %c0_81] : memref<2x8xf32, #tpu.memory_space<vmem>>, vector<2x8xf32>
    tpu.vector_store %arg23[%c0_80, %c0_81], %188 {strides = array<i32>} : memref<2x8xf32, #tpu.memory_space<vmem>>, vector<2x8xf32>,
    return
  }
}

</mosaic_0001>

<bundles_post_ra>
// kernel: transformer_forward.1
= control target key start
LH: loop header
LB: loop body
LE: loop exit
PB: predicated region body
PF: predicated region fallthrough
CT: control target
= control target key end

     0   :  { %s2012_s0 = inlined_call_operand.vmem [shape: s32[16,1], index: 0, kind: input, shape index: {}]   ;;  %s2013_s1 = inlined_call_operand.vmem [shape: f32[64,32], index: 1, kind: input, shape index: {}]   ;;  %s2014_s2 = inlined_call_operand.vmem [shape: f32[16,32], index: 2, kind: input, shape index: {}]   ;;  %s2015_s3 = inlined_call_operand.vmem [shape: f32[32,96], index: 3, kind: input, shape index: {}]   ;;  %s2016_s4 = inlined_call_operand.vmem [shape: f32[1,96], index: 4, kind: input, shape index: {}]   ;;  %s2017_s5 = inlined_call_operand.vmem [shape: f32[32,32], index: 5, kind: input, shape index: {}]   ;;  %s2018_s6 = inlined_call_operand.vmem [shape: f32[1,32], index: 6, kind: input, shape index: {}]   ;;  %s2019_s7 = inlined_call_operand.vmem [shape: f32[1,32], index: 7, kind: input, shape index: {}]   ;;  %s2020_s8 = inlined_call_operand.vmem [shape: f32[1,32], index: 8, kind: input, shape index: {}]   ;;  %s2021_s9 = inlined_call_operand.vmem [shape: f32[32,128], index: 9, kind: input, shape index: {}]   ;;  %s2022_s10 = inlined_call_operand.vmem [shape: f32[1,128], index: 10, kind: input, shape index: {}]   ;;  %s2023_s11 = inlined_call_operand.vmem [shape: f32[128,32], index: 11, kind: input, shape index: {}]   ;;  %s2024_s12 = inlined_call_operand.vmem [shape: f32[1,32], index: 12, kind: input, shape index: {}]   ;;  %s2025_s13 = inlined_call_operand.vmem [shape: f32[1,32], index: 13, kind: input, shape index: {}]   ;;  %s2026_s14 = inlined_call_operand.vmem [shape: f32[1,32], index: 14, kind: input, shape index: {}]   ;;  %s2027_s15 = inlined_call_operand.vmem [shape: f32[32,8], index: 15, kind: input, shape index: {}]   ;;  %s2028_s16 = inlined_call_operand.vmem [shape: f32[8,32], index: 16, kind: input, shape index: {}]   ;;  %s2029_s17 = inlined_call_operand.vmem [shape: f32[32,32], index: 17, kind: input, shape index: {}]   ;;  %s2030_s18 = inlined_call_operand.vmem [shape: f32[1,32], index: 18, kind: input, shape index: {}]   ;;  %s2031_s19 = inlined_call_operand.vmem [shape: f32[32,32], index: 19, kind: input, shape index: {}]   ;;  %s2032_s20 = inlined_call_operand.vmem [shape: f32[1,32], index: 20, kind: input, shape index: {}]   ;;  %s2033_s21 = inlined_call_operand.vmem [shape: f32[32,8], index: 21, kind: input, shape index: {}]   ;;  %s2034_s22 = inlined_call_operand.vmem [shape: f32[1,8], index: 22, kind: input, shape index: {}]   ;;  %s2035_s23 = inlined_call_operand.hbm [shape: f32[2,8], index: 23, kind: output, shape index: {}]  }
   0x1   :  { %2040 = sst [smem:[#allocation5_spill]] %s2012_s0 }
   0x2   :  { %2041 = sst [smem:[#allocation6_spill]] %s2013_s1 }
   0x3   :  { %2042 = sst [smem:[#allocation7_spill]] %s2014_s2 }
   0x4   :  { %2043 = sst [smem:[#allocation8_spill]] %s2015_s3 }
   0x5   :  { %2044 = sst [smem:[#allocation9_spill]] %s2016_s4 }
   0x6   :  { %2045 = sst [smem:[#allocation10_spill]] %s2017_s5 }
   0x7   :  { %2046 = sst [smem:[#allocation11_spill]] %s2018_s6 }
   0x8   :  { %2047 = sst [smem:[#allocation12_spill]] %s2019_s7 }
   0x9   :  { %2048 = sst [smem:[#allocation13_spill]] %s2030_s18 }
   0xa   :  { %s2049_s24 = sld [smem:[#allocation5_spill]]  ;;  %s2050_s18 = sld [smem:[#allocation6_spill]]  ;;  %v1612_v2 = vmov 0  }
   0xb   :  { %1563 = vset.pattern.permute.xlu0 %v1612_v2 }
  0x10   :  { %v75_v0 = vld [vmem:[%s2049_s24] sm:$0xff]  ;;  %v91_v3 = vld [vmem:[%s2050_s18 + $0x8] sm:$0xff]  ;;  %v92_v4 = vld [vmem:[%s2050_s18 + $0x10] sm:$0xff] }
  0x11   :  { %v90_v1 = vld [vmem:[%s2050_s18] sm:$0xff]  ;;  %v93_v5 = vld [vmem:[%s2050_s18 + $0x18] sm:$0xff]  ;;  %80 = vperm.xlu0 %1563, %v75_v0   ;;  %v76_v6 = vld [vmem:[%s2049_s24 + $0x8] sm:$0xff] }
  0x12   :  { %v1458_v7 = vpack.c.bf16 %v91_v3, %v90_v1  ;;  %v1462_v8 = vpack.c.bf16 %v93_v5, %v92_v4  ;;  %v94_v9 = vld [vmem:[%s2050_s18 + $0x20] sm:$0xff]  ;;  %v95_v10 = vld [vmem:[%s2050_s18 + $0x28] sm:$0xff] }
  0x13   :  { %28 = vsyncpa [#allocation3], 0  ;;  %v1466_v11 = vpack.c.bf16 %v95_v10, %v94_v9  ;;  %v96_v12 = vld [vmem:[%s2050_s18 + $0x30] sm:$0xff]  ;;  %v97_v13 = vld [vmem:[%s2050_s18 + $0x38] sm:$0xff]  ;;  %s2051_s6 = sld [smem:[#allocation8_spill]]  ;;  %v77_v18 = vlaneseq  ;;  %vm98_vm0 = vcmask 523264  }
  0x14   :  { %1459 = vmatprep.subr.bf16.mxu0 %v1458_v7  ;;  %v1470_v17 = vpack.c.bf16 %v97_v13, %v96_v12  ;;  %v1613_v21 = vmov 0.0   ;;  %s2052_s30 = sld [smem:[#allocation7_spill]]  ;;  %vm191_vm3 = vcmask 261120   ;;  %v287_v33 = vld [vmem:[%s2027_s15] sm:$0xff]  ;;  %v288_v34 = vld [vmem:[%s2027_s15 + $0x8] sm:$0xff]  ;;  %v289_v36 = vld [vmem:[%s2027_s15 + $0x10] sm:$0xff] }
  0x15   :  { %1461 = vmatpush3.bf16.msra.mxu0 %v1458_v7  ;;  %83 = vperm.xlu0 %1563, %v76_v6   ;;  %v78_v19 = vand.u32 127, %v77_v18  ;;  %v1482_v35 = vpack.c.bf16 %v288_v34, %v287_v33  ;;  %v290_v37 = vld [vmem:[%s2027_s15 + $0x18] sm:$0xff]  ;;  %s2053_s28 = sld [smem:[#allocation9_spill]]  ;;  %s1614_s29 = smov 64   ;;  %v412_v52 = vld [vmem:[%s2028_s16] sm:$0xff]  ;;  %vm413_vm4 = vcmask 64512  }
  0x16   :  { %1463 = vmatprep.subr.bf16.mxu0 %v1462_v8  ;;  %v1486_v38 = vpack.c.bf16 %v290_v37, %v289_v36  ;;  %s1615_s3 = smov 96   ;;  %s2055_s7 = sld [smem:[#allocation11_spill]]  ;;  %vm1617_vm5 = vmmov 0   ;;  %vm925_vm6 = vcmask 1040384   ;;  %vm1185_vm9 = vcmask 58368  }
  0x17   :  { %s2056_s18 = sld [smem:[#allocation12_spill]] }
  0x19   :  { %v180_v14 = vld [vmem:[%s2051_s6] sm:$0xff]  ;;  %v181_v15 = vld [vmem:[%s2051_s6 + $0x8] sm:$0xff]  ;;  %1465 = vmatpush3.bf16.msra.mxu0 %v1462_v8  ;;  %v182_v25 = vld [vmem:[%s2051_s6 + $0x10] sm:$0xff] }
  0x1a   :  { %v1474_v16 = vpack.c.bf16 %v181_v15, %v180_v14  ;;  %1467 = vmatprep.subr.bf16.mxu0 %v1466_v11  ;;  %v183_v26 = vld [vmem:[%s2051_s6 + $0x18] sm:$0xff]  ;;  %v89_v28 = vld [vmem:[%s2052_s30] sm:$0xff]  ;;  %s2054_s30 = sld [smem:[#allocation10_spill]] }
  0x1b   :  { %v1478_v27 = vpack.c.bf16 %v183_v26, %v182_v25  ;;  %v1214_v39 = vld [vmem:[%s2053_s28] ss:$0 sm:$0xff] }
  0x1c   :  { %1475 = vmatprep.subr.bf16.mxu1 %v1474_v16  ;;  %v1225_v36 = vld [vmem:[%s2055_s7] ss:$0 sm:$0xff] }
  0x1d   :  { %1477 = vmatpush3.bf16.msra.mxu1 %v1474_v16  ;;  %1469 = vmatpush3.bf16.msra.mxu0 %v1466_v11 }
  0x1e   :  { %1471 = vmatprep.subr.bf16.mxu0 %v1470_v17  ;;  %1479 = vmatprep.subr.bf16.mxu1 %v1478_v27 }
  0x20   :  { %v523_v15 = vld [vmem:[%s2054_s30] sm:$0xff]  ;;  %v524_v16 = vld [vmem:[%s2054_s30 + $0x8] sm:$0xff]  ;;  %v525_v18 = vld [vmem:[%s2054_s30 + $0x10] sm:$0xff] }
  0x21   :  { %1473 = vmatpush3.bf16.msra.mxu0 %v1470_v17  ;;  %1481 = vmatpush3.bf16.msra.mxu1 %v1478_v27  ;;  %v1490_v17 = vpack.c.bf16 %v524_v16, %v523_v15 }
  0x22   :  { %1483 = vmatprep.subr.bf16.mxu1 %v1482_v35  ;;  %1360 = vmatprep.subr.mxu0 %v412_v52 }
  0x90   :  { %v81_v20 = vpop.permute.xlu0 %80 }
  0x91   :  { %vm85_vm1 = vcmp.eq.s32.totalorder %v78_v19, %v81_v20 }
  0x92   :  { %v87_v22 = vsel %vm85_vm1, 1.0, %v1613_v21 }
  0x93   :  { %1332 = vmatprep.mubr.msk.f32.mxu0 %vm98_vm0, %v87_v22 }
  0x94   :  { %v84_v23 = vpop.permute.xlu0 %83 }
  0x95   :  { %vm86_vm2 = vcmp.eq.s32.totalorder %v78_v19, %v84_v23  ;;  %v526_v19 = vld [vmem:[%s2054_s30 + $0x18] sm:$0xff] }
  0x96   :  { %v88_v24 = vsel %vm86_vm2, 1.0, %v1613_v21  ;;  %v1494_v20 = vpack.c.bf16 %v526_v19, %v525_v18 }
  0x97   :  { %1333 = vmatmul.mubr.msk.f32.vlgmr.msra.gmra.mrb[0].mxu0 %vm98_vm0, %v88_v24 }
  0x98   :  { %1361 = vmatpush3.msra.mxu0 %v412_v52 }
 0x16a   :  { %v1334_v29 = vpop.f32.mrb[0].mxu0 }
 0x16b   :  { %v171_v30 = vpop.f32.mrb[1].mxu0  ;;  %v1788_v32 = vadd.f32 %v1334_v29, %v89_v28 }
 0x16c   :  { %v1786_v31 = vadd.f32 %v171_v30, %v89_v28 }
 0x16e   :  { %1343 = vmatprep.mubr.msk.f32.mxu1 %vm191_vm3, %v1786_v31 }
 0x16f   :  { %1344 = vmatmul.mubr.msk.f32.vlgmr.msra.gmra.mrb[0].mxu1 %vm191_vm3, %v1788_v32 }
 0x170   :  { %1485 = vmatpush3.bf16.msra.mxu1 %v1482_v35 }
 0x171   :  { %1487 = vmatprep.subr.bf16.mxu1 %v1486_v38 }
 0x174   :  { %1489 = vmatpush3.bf16.msra.mxu1 %v1486_v38 }
 0x175   :  { %1491 = vmatprep.subr.bf16.mxu1 %v1490_v17 }
 0x242   :  { %v1345_v40 = vpop.f32.mrb[0].mxu1 }
 0x243   :  { %v264_v41 = vpop.f32.mrb[1].mxu1  ;;  %v270_v43 = vadd.f32 %v1345_v40, %v1214_v39 }
 0x244   :  { %v265_v42 = vadd.f32 %v1214_v39, %v264_v41 }
 0x245   :  { %v274_v47 = vmul.f32 0.5, %v270_v43 }
 0x246   :  { %511 = vrot.lane.b32.xlu0 %v265_v42, %s1614_s29  ;;  %276 = vrot.lane.b32.xlu1 %v265_v42, %s1615_s3  ;;  %v273_v44 = vmul.f32 0.5, %v265_v42 }
 0x24a   :  { %281 = vrot.lane.b32.xlu1 %v270_v43, %s1615_s3 }
 0x24e   :  { %515 = vrot.lane.b32.xlu1 %v270_v43, %s1614_s29 }
 0x2b8   :  { %v277_v45 = vpop.permute.xlu1 %276  ;;  %v512_v24 = vpop.permute.xlu0 %511 }
 0x2b9   :  { %v279_v46 = vmul.f32 %v277_v45, %v273_v44  ;;  %v285_v50 = vmul.f32 %v277_v45, %v274_v47 }
 0x2bb   :  { %1354 = vmatprep.mubr.msk.f32.mxu1 %vm191_vm3, %v279_v46 }
 0x2bc   :  { %v282_v48 = vpop.permute.xlu1 %281 }
 0x2bd   :  { %v284_v49 = vmul.f32 %v282_v48, %v273_v44  ;;  %v286_v51 = vmul.f32 %v282_v48, %v274_v47  ;;  %v666_v47 = vld [vmem:[%s2021_s9] sm:$0xff]  ;;  %v667_v48 = vld [vmem:[%s2021_s9 + $0x8] sm:$0xff] }
 0x2bf   :  { %1355 = vmatmul.mubr.msk.f32.vlgmr.msra.gmra.mrb[2].mxu1 %vm191_vm3, %v284_v49  ;;  %v668_v49 = vld [vmem:[%s2021_s9 + $0x10] sm:$0xff] }
 0x2c0   :  { %1357 = vmatprep.mubr.msk.f32.mxu1 %vm191_vm3, %v285_v50  ;;  %1493 = vmatpush3.bf16.msra.mxu1 %v1490_v17  ;;  %v516_v22 = vpop.permute.xlu1 %515  ;;  %v1498_v50 = vpack.c.bf16 %v667_v48, %v666_v47  ;;  %v1233_v47 = vld [vmem:[%s2024_s12] ss:$0 sm:$0xff] }
 0x2c1   :  { %1495 = vmatprep.subr.bf16.mxu1 %v1494_v20 }
 0x2c2   :  { %1499 = vmatprep.subr.bf16.mxu0 %v1498_v50 }
 0x2c3   :  { %1358 = vmatmul.mubr.msk.f32.gmra.mrb[4].mxu1 %vm191_vm3, %v286_v51  ;;  %v669_v51 = vld [vmem:[%s2021_s9 + $0x18] sm:$0xff] }
 0x2c4   :  { %1497 = vmatpush3.bf16.msra.mxu1 %v1494_v20  ;;  %v1502_v52 = vpack.c.bf16 %v669_v51, %v668_v49 }
 0x392   :  { %v1356_v53 = vpop.f32.mrb[2].mxu1 }
 0x393   :  { %v369_v54 = vpop.f32.mrb[3].mxu1 }
 0x394   :  { %v388_v55 = vmax.f32 %v369_v54, %v1356_v53 }
 0x396   :  { %v389_v56 = vsub.f32 %v369_v54, %v388_v55  ;;  %v392_v57 = vsub.f32 %v1356_v53, %v388_v55  ;;  %v1359_v58 = vpop.f32.mrb[4].mxu1  ;;  %v760_v53 = vld [vmem:[%s2023_s11] sm:$0xff]  ;;  %v761_v54 = vld [vmem:[%s2023_s11 + $0x8] sm:$0xff]  ;;  %v762_v55 = vld [vmem:[%s2023_s11 + $0x10] sm:$0xff] }
 0x397   :  { %v379_v59 = vpop.f32.mrb[5].mxu1 }
 0x398   :  { %v390_v60 = vmul.f32 1.442695, %v389_v56  ;;  %v393_v61 = vmul.f32 1.442695, %v392_v57  ;;  %v400_v62 = vmax.f32 %v379_v59, %v1359_v58  ;;  %v1506_v56 = vpack.c.bf16 %v761_v54, %v760_v53  ;;  %v763_v57 = vld [vmem:[%s2023_s11 + $0x18] sm:$0xff] }
 0x39a   :  { %1564 = vpow2.f32 %v390_v60  ;;  %v401_v63 = vsub.f32 %v379_v59, %v400_v62  ;;  %v404_v0 = vsub.f32 %v1359_v58, %v400_v62  ;;  %v1510_v58 = vpack.c.bf16 %v763_v57, %v762_v55  ;;  %v764_v59 = vld [vmem:[%s2023_s11 + $0x20] sm:$0xff]  ;;  %v765_v60 = vld [vmem:[%s2023_s11 + $0x28] sm:$0xff]  ;;  %1507 = vmatprep.subr.bf16.mxu1 %v1506_v56  ;;  %v766_v62 = vld [vmem:[%s2023_s11 + $0x30] sm:$0xff] }
 0x39b   :  { %1566 = vpow2.f32 %v393_v61  ;;  %v1514_v61 = vpack.c.bf16 %v765_v60, %v764_v59  ;;  %v927_v60 = vld [vmem:[%s2029_s17] sm:$0xff] }
 0x39c   :  { %v402_v1 = vmul.f32 1.442695, %v401_v63  ;;  %v405_v2 = vmul.f32 1.442695, %v404_v0  ;;  %v767_v63 = vld [vmem:[%s2023_s11 + $0x38] sm:$0xff] }
 0x39d   :  { %v1518_v0 = vpack.c.bf16 %v767_v63, %v766_v62  ;;  %v929_v62 = vld [vmem:[%s2029_s17 + $0x10] sm:$0xff]  ;;  %v1616_v63 = vmov 0.0|0.0  }
 0x39e   :  { %1568 = vpow2.f32 %v402_v1  ;;  %v768_v1 = vld [vmem:[%s2023_s11 + $0x40] sm:$0xff] }
 0x39f   :  { %1570 = vpow2.f32 %v405_v2  ;;  %v769_v2 = vld [vmem:[%s2023_s11 + $0x48] sm:$0xff] }
 0x3a4   :  { %v1565_v3 = vpop.eup %1564 }
 0x3a5   :  { %v1567_v4 = vpop.eup %1566 }
 0x3a6   :  { %v395_v5 = vadd.f32 %v1567_v4, %v1565_v3 }
 0x3a8   :  { %v1569_v6 = vpop.eup %1568  ;;  %1572 = vrcp.f32 %v395_v5  ;;  %v771_v5 = vld [vmem:[%s2023_s11 + $0x58] sm:$0xff] }
 0x3a9   :  { %v1571_v7 = vpop.eup %1570 }
 0x3aa   :  { %v407_v8 = vadd.f32 %v1571_v7, %v1569_v6 }
 0x3ac   :  { %1574 = vrcp.f32 %v407_v8  ;;  %v773_v8 = vld [vmem:[%s2023_s11 + $0x68] sm:$0xff] }
 0x3b2   :  { %v1573_v9 = vpop.eup %1572 }
 0x3b3   :  { %v398_v10 = vmul.f32 %v1573_v9, %v1565_v3  ;;  %v399_v11 = vmul.f32 %v1573_v9, %v1567_v4  ;;  %v1522_v3 = vpack.c.bf16 %v769_v2, %v768_v1  ;;  %v770_v4 = vld [vmem:[%s2023_s11 + $0x50] sm:$0xff]  ;;  %v930_v1 = vld [vmem:[%s2029_s17 + $0x18] sm:$0xff] }
 0x3b4   :  { %v1542_v2 = vpack.c.bf16 %v930_v1, %v929_v62  ;;  %v1103_v62 = vld [vmem:[%s2033_s21 + $0x10] sm:$0xff] }
 0x3b5   :  { %1362 = vmatprep.mubr.msk.f32.mxu0 %vm413_vm4, %v398_v10 }
 0x3b6   :  { %v1575_v12 = vpop.eup %1574  ;;  %1363 = vmatmul.mubr.msk.f32.vlgmr.msra.gmra.mrb[2].mxu0 %vm413_vm4, %v399_v11 }
 0x3b7   :  { %v410_v13 = vmul.f32 %v1575_v12, %v1569_v6  ;;  %v411_v14 = vmul.f32 %v1575_v12, %v1571_v7  ;;  %1501 = vmatpush3.bf16.msra.mxu0 %v1498_v50  ;;  %v1526_v6 = vpack.c.bf16 %v771_v5, %v770_v4  ;;  %v772_v7 = vld [vmem:[%s2023_s11 + $0x60] sm:$0xff] }
 0x3b8   :  { %1503 = vmatprep.subr.bf16.mxu0 %v1502_v52  ;;  %v1530_v9 = vpack.c.bf16 %v773_v8, %v772_v7 }
 0x3b9   :  { %1365 = vmatprep.mubr.msk.f32.mxu0 %vm413_vm4, %v410_v13 }
 0x3ba   :  { %1366 = vmatmul.mubr.msk.f32.gmra.mrb[4].mxu0 %vm413_vm4, %v411_v14 }
 0x3bb   :  { %1505 = vmatpush3.bf16.msra.mxu0 %v1502_v52 }
 0x3bc   :  { %1538 = vmatprep.subr.bf16.mxu0 %v1616_v63 }
 0x489   :  { %v1364_v23 = vpop.f32.mrb[2].mxu0 }
 0x48a   :  { %v518_v25 = vmul.f32 %v1364_v23, %v516_v22  ;;  %v492_v26 = vpop.f32.mrb[3].mxu0 }
 0x48b   :  { %v514_v27 = vmul.f32 %v512_v24, %v492_v26 }
 0x48d   :  { %v519_v28 = vadd.f32 %v518_v25, %v514_v27  ;;  %v1367_v29 = vpop.f32.mrb[4].mxu0  ;;  %v1228_v27 = vld [vmem:[%s2056_s18] ss:$0 sm:$0xff] }
 0x48e   :  { %v521_v30 = vmul.f32 %v1367_v29, %v516_v22  ;;  %v502_v33 = vpop.f32.mrb[5].mxu0  ;;  %v1229_v29 = vld [vmem:[%s2020_s8] ss:$0 sm:$0xff]  ;;  %s2057_s8 = sld [smem:[#allocation13_spill]] }
 0x48f   :  { %v520_v34 = vmul.f32 %v512_v24, %v502_v33  ;;  %1376 = vmatprep.mubr.msk.f32.mxu1 %vm191_vm3, %v519_v28 }
 0x491   :  { %v522_v35 = vadd.f32 %v521_v30, %v520_v34 }
 0x493   :  { %1377 = vmatmul.mubr.msk.f32.vlgmr.msra.gmra.mrb[6].mxu1 %vm191_vm3, %v522_v35 }
 0x494   :  { %1509 = vmatpush3.bf16.msra.mxu1 %v1506_v56 }
 0x495   :  { %1511 = vmatprep.subr.bf16.mxu1 %v1510_v58 }
 0x498   :  { %1513 = vmatpush3.bf16.msra.mxu1 %v1510_v58 }
 0x499   :  { %1515 = vmatprep.subr.bf16.mxu1 %v1514_v61 }
 0x49c   :  { %1517 = vmatpush3.bf16.msra.mxu1 %v1514_v61  ;;  %v928_v61 = vld [vmem:[%s2029_s17 + $0x8] sm:$0xff] }
 0x49d   :  { %1519 = vmatprep.subr.bf16.mxu1 %v1518_v0 }
 0x4a0   :  { %1521 = vmatpush3.bf16.msra.mxu1 %v1518_v0  ;;  %v1539_v0 = vpack.c.bf16 %v928_v61, %v927_v60 }
 0x4a1   :  { %1523 = vmatprep.subr.bf16.mxu1 %v1522_v3 }
 0x4a4   :  { %1525 = vmatpush3.bf16.msra.mxu1 %v1522_v3 }
 0x4a5   :  { %1527 = vmatprep.subr.bf16.mxu1 %v1526_v6 }
 0x4a8   :  { %1529 = vmatpush3.bf16.msra.mxu1 %v1526_v6 }
 0x4a9   :  { %1531 = vmatprep.subr.bf16.mxu1 %v1530_v9 }
 0x4ac   :  { %1533 = vmatpush3.bf16.msra.mxu1 %v1530_v9 }
 0x566   :  { %v1378_v37 = vpop.f32.mrb[6].mxu1 }
 0x567   :  { %v612_v38 = vadd.f32 %v1378_v37, %v1225_v36  ;;  %v606_v39 = vpop.f32.mrb[7].mxu1 }
 0x568   :  { %v607_v40 = vadd.f32 %v1225_v36, %v606_v39  ;;  %v774_v39 = vld [vmem:[%s2023_s11 + $0x70] sm:$0xff] }
 0x569   :  { %v1834_v41 = vadd.f32 %v612_v38, %v1788_v32 }
 0x56a   :  { %v1837_v42 = vadd.f32 %v607_v40, %v1786_v31  ;;  %v775_v40 = vld [vmem:[%s2023_s11 + $0x78] sm:$0xff] }
 0x56b   :  { %v622_v43 = vsel %vm191_vm3, %v1834_v41, 0.0  ;;  %v629_v32 = vmul.f32 %v1834_v41, %v1834_v41 }
 0x56c   :  { %623 = vadd.xlane.f32.xlu1 %v622_v43  ;;  %v619_v44 = vsel %vm191_vm3, %v1837_v42, 0.0  ;;  %v628_v45 = vmul.f32 %v1837_v42, %v1837_v42 }
 0x56d   :  { %620 = vadd.xlane.f32.xlu0 %v619_v44  ;;  %v633_v31 = vsel %vm191_vm3, %v629_v32, 0.0 }
 0x56e   :  { %v630_v46 = vsel %vm191_vm3, %v628_v45, 0.0 }
 0x571   :  { %631 = vadd.xlane.f32.xlu0 %v630_v46 }
 0x575   :  { %634 = vadd.xlane.f32.xlu0 %v633_v31 }
 0x5f9   :  { %v624_v12 = vpop.xlane.xlu1 %623 }
 0x5fa   :  { %v621_v10 = vpop.xlane.xlu0 %620  ;;  %v627_v14 = vmul.f32 0.03125, %v624_v12 }
 0x5fb   :  { %v626_v11 = vmul.f32 0.03125, %v621_v10 }
 0x5fc   :  { %v639_v19 = vmul.f32 %v627_v14, %v627_v14  ;;  %v643_v30 = vsub.f32 %v1834_v41, %v627_v14  ;;  %v1230_v41 = vld [vmem:[%s2022_s10] ss:$0 sm:$0xff] }
 0x5fd   :  { %v638_v15 = vmul.f32 %v626_v11, %v626_v11  ;;  %v642_v25 = vsub.f32 %v1837_v42, %v626_v11  ;;  %v1534_v42 = vpack.c.bf16 %v775_v40, %v774_v39 }
 0x5fe   :  { %v632_v13 = vpop.xlane.xlu0 %631 }
 0x5ff   :  { %v636_v16 = vmul.f32 0.03125, %v632_v13  ;;  %1535 = vmatprep.subr.bf16.mxu1 %v1534_v42 }
 0x600   :  { %1537 = vmatpush3.bf16.msra.mxu1 %v1534_v42 }
 0x601   :  { %v640_v17 = vsub.f32 %v636_v16, %v638_v15 }
 0x602   :  { %v635_v18 = vpop.xlane.xlu0 %634 }
 0x603   :  { %v644_v20 = vadd.f32 1e-05, %v640_v17  ;;  %v637_v22 = vmul.f32 0.03125, %v635_v18 }
 0x605   :  { %1576 = vrsqrt.f32 %v644_v20  ;;  %v641_v23 = vsub.f32 %v637_v22, %v639_v19  ;;  %v1234_v20 = vld [vmem:[%s2025_s13] ss:$0 sm:$0xff] }
 0x607   :  { %v645_v24 = vadd.f32 1e-05, %v641_v23 }
 0x609   :  { %1578 = vrsqrt.f32 %v645_v24 }
 0x60f   :  { %v1577_v26 = vpop.eup %1576 }
 0x610   :  { %v648_v28 = vmul.f32 %v1577_v26, %v642_v25  ;;  %v1235_v25 = vld [vmem:[%s2026_s14] ss:$0 sm:$0xff] }
 0x612   :  { %v656_v33 = vmul.f32 %v1228_v27, %v648_v28 }
 0x613   :  { %v1579_v34 = vpop.eup %1578 }
 0x614   :  { %v649_v35 = vmul.f32 %v1579_v34, %v643_v30  ;;  %v664_v36 = vadd.f32 %v1229_v29, %v656_v33 }
 0x616   :  { %v657_v37 = vmul.f32 %v1228_v27, %v649_v35  ;;  %1387 = vmatprep.mubr.msk.f32.mxu0 %vm191_vm3, %v664_v36 }
 0x618   :  { %v665_v38 = vadd.f32 %v1229_v29, %v657_v37 }
 0x61a   :  { %1388 = vmatmul.mubr.msk.f32.vlgmr.msra.gmra.mrb[6].mxu0 %vm191_vm3, %v665_v38 }
 0x61b   :  { %1433 = vmatprep.mubr.msk.f32.mxu0 %vm1617_vm5, %v1613_v21  ;;  %1540 = vmatpush3.bf16.msra.mxu0 %v1539_v0  ;;  %v1104_v0 = vld [vmem:[%s2033_s21 + $0x18] sm:$0xff] }
 0x61c   :  { %1541 = vmatprep.subr.bf16.mxu0 %v1616_v63  ;;  %v1554_v1 = vpack.c.bf16 %v1104_v0, %v1103_v62 }
 0x61f   :  { %1543 = vmatpush3.bf16.msra.mxu0 %v1542_v2  ;;  %v1238_v2 = vld [vmem:[%s2032_s20] ss:$0 sm:$0xff]  ;;  %s1618_s20 = smov [#allocation2]  }
 0x620   :  { %1544 = vmatprep.subr.bf16.mxu0 %v1616_v63 }
 0x6ed   :  { %v1389_v43 = vpop.f32.mrb[6].mxu0 }
 0x6ee   :  { %v755_v44 = vadd.f32 %v1389_v43, %v1230_v41  ;;  %v749_v45 = vpop.f32.mrb[7].mxu0 }
 0x6ef   :  { %v750_v46 = vadd.f32 %v1230_v41, %v749_v45  ;;  %v1014_v45 = vld [vmem:[%s2031_s19] sm:$0xff] }
 0x6f0   :  { %v759_v31 = vmax.f32 %v755_v44, 0.0 }
 0x6f1   :  { %v758_v32 = vmax.f32 %v750_v46, 0.0  ;;  %v1015_v46 = vld [vmem:[%s2031_s19 + $0x8] sm:$0xff] }
 0x6f3   :  { %1422 = vmatprep.mubr.f32.mxu1 %v758_v32 }
 0x6f4   :  { %1423 = vmatmul.mubr.f32.vlgmr.msra.gmra.mrb[8].mxu1 %v759_v31 }
 0x7c7   :  { %v1424_v48 = vpop.f32.mrb[8].mxu1 }
 0x7c8   :  { %v855_v49 = vadd.f32 %v1424_v48, %v1233_v47  ;;  %v849_v50 = vpop.f32.mrb[9].mxu1  ;;  %v1545_v48 = vpack.c.bf16 %v1015_v46, %v1014_v45 }
 0x7c9   :  { %v850_v51 = vadd.f32 %v1233_v47, %v849_v50  ;;  %v1016_v50 = vld [vmem:[%s2031_s19 + $0x10] sm:$0xff] }
 0x7ca   :  { %v859_v52 = vadd.f32 %v855_v49, %v665_v38 }
 0x7cb   :  { %v858_v53 = vadd.f32 %v850_v51, %v664_v36  ;;  %v1017_v51 = vld [vmem:[%s2031_s19 + $0x18] sm:$0xff] }
 0x7cc   :  { %v865_v54 = vsel %vm191_vm3, %v859_v52, 0.0  ;;  %v871_v55 = vmul.f32 %v859_v52, %v859_v52 }
 0x7cd   :  { %866 = vadd.xlane.f32.xlu0 %v865_v54  ;;  %v862_v56 = vsel %vm191_vm3, %v858_v53, 0.0  ;;  %v870_v57 = vmul.f32 %v858_v53, %v858_v53 }
 0x7ce   :  { %863 = vadd.xlane.f32.xlu1 %v862_v56  ;;  %v875_v58 = vsel %vm191_vm3, %v871_v55, 0.0  ;;  %v1101_v55 = vld [vmem:[%s2033_s21] sm:$0xff]  ;;  %v1102_v56 = vld [vmem:[%s2033_s21 + $0x8] sm:$0xff]  ;;  %s1204_s21 = sshll.u32 %s1618_s20, 4  ;;  %s1205_s21 = int_to_ptr.vmem [resolvable:$true] %s1204_s21 }
 0x7cf   :  { %v872_v59 = vsel %vm191_vm3, %v870_v57, 0.0  ;;  %v1551_v60 = vpack.c.bf16 %v1102_v56, %v1101_v55  ;;  %p1593_p1 = scmp.lt.s32.totalorder %s1205_s21, %s1205_s21 }
 0x7d1   :  { %876 = vadd.xlane.f32.xlu0 %v875_v58 }
 0x7d2   :  { %873 = vadd.xlane.f32.xlu1 %v872_v59 }
 0x85a   :  { %v867_v3 = vpop.xlane.xlu0 %866 }
 0x85b   :  { %v869_v4 = vmul.f32 0.03125, %v867_v3  ;;  %v864_v5 = vpop.xlane.xlu1 %863 }
 0x85c   :  { %v868_v6 = vmul.f32 0.03125, %v864_v5 }
 0x85d   :  { %v881_v8 = vmul.f32 %v869_v4, %v869_v4  ;;  %v885_v17 = vsub.f32 %v859_v52, %v869_v4  ;;  %v1548_v52 = vpack.c.bf16 %v1017_v51, %v1016_v50 }
 0x85e   :  { %v877_v7 = vpop.xlane.xlu0 %876  ;;  %v880_v11 = vmul.f32 %v868_v6, %v868_v6  ;;  %v884_v19 = vsub.f32 %v858_v53, %v868_v6  ;;  %v1236_v53 = vld [vmem:[%s2057_s8] ss:$0 sm:$0xff] }
 0x85f   :  { %v879_v9 = vmul.f32 0.03125, %v877_v7  ;;  %v874_v10 = vpop.xlane.xlu1 %873  ;;  %v1240_v6 = vld [vmem:[%s2034_s22] ss:$0 sm:$0xff]  ;;  %s1588_s22 = scalar_lea.vmem %s1205_s21, 32 }
 0x860   :  { %v878_v12 = vmul.f32 0.03125, %v874_v10  ;;  %p1589_p0 = scmp.ne.s32.totalorder %s1205_s21, %s1588_s22  ;;  %p1594_p2 = scmp.lt.s32.totalorder %s1588_s22, %s1588_s22 }
 0x861   :  { %v883_v13 = vsub.f32 %v879_v9, %v881_v8 }
 0x862   :  { %v882_v14 = vsub.f32 %v878_v12, %v880_v11  ;;  %p1595_p3 = por %p1594_p2, %p1593_p1 }
 0x863   :  { %v887_v15 = vadd.f32 1e-05, %v883_v13 }
 0x864   :  { %v886_v16 = vadd.f32 1e-05, %v882_v14  ;;  %p1596_p4 = pnand %p1595_p3, %p1589_p0 }
 0x865   :  { %1580 = vrsqrt.f32 %v887_v15 }
 0x866   :  { %1582 = vrsqrt.f32 %v886_v16 }
 0x86f   :  { %v1581_v18 = vpop.eup %1580 }
 0x870   :  { %v1583_v22 = vpop.eup %1582  ;;  %v891_v23 = vmul.f32 %v1581_v18, %v885_v17 }
 0x871   :  { %v890_v24 = vmul.f32 %v1583_v22, %v884_v19 }
 0x872   :  { %v899_v26 = vmul.f32 %v1234_v20, %v891_v23 }
 0x873   :  { %v898_v27 = vmul.f32 %v1234_v20, %v890_v24 }
 0x874   :  { %v907_v28 = vadd.f32 %v1235_v25, %v899_v26 }
 0x875   :  { %v906_v29 = vadd.f32 %v1235_v25, %v898_v27 }
 0x876   :  { %v917_v30 = vsel %vm191_vm3, %v907_v28, 0.0 }
 0x877   :  { %v908_v33 = vsel %vm191_vm3, %v906_v29, 0.0  ;;  %v918_v34 = vrot.slane %v917_v30, 4 }
 0x878   :  { %v909_v35 = vrot.slane %v908_v33, 4 }
 0x879   :  { %v919_v36 = vadd.f32 %v918_v34, %v917_v30 }
 0x87a   :  { %v910_v37 = vadd.f32 %v909_v35, %v908_v33 }
 0x87b   :  { %v920_v38 = vrot.slane %v919_v36, 2 }
 0x87c   :  { %v911_v39 = vrot.slane %v910_v37, 2 }
 0x87d   :  { %v921_v40 = vadd.f32 %v920_v38, %v919_v36 }
 0x87e   :  { %v912_v42 = vadd.f32 %v911_v39, %v910_v37 }
 0x87f   :  { %v922_v41 = vrot.slane %v921_v40, 1 }
 0x880   :  { %v913_v43 = vrot.slane %v912_v42, 1 }
 0x881   :  { %v923_v44 = vadd.f32 %v922_v41, %v921_v40 }
 0x882   :  { %v914_v32 = vadd.f32 %v913_v43, %v912_v42 }
 0x883   :  { %v924_v31 = vmul.f32 0.125, %v923_v44 }
 0x884   :  { %v916_v47 = vmul.f32 0.125, %v914_v32 }
 0x886   :  { %v926_v49 = vsel %vm925_vm6, %v916_v47, %v924_v31 }
 0x887   :  { %1434 = vmatmul.mubr.msk.f32.vlgmr.msra.gmra.mrb[8].mxu0 %vm191_vm3, %v926_v49 }
 0x888   :  { %1546 = vmatpush3.bf16.msra.mxu0 %v1545_v48  ;;  %1444 = vmatprep.mubr.msk.f32.mxu0 %vm1617_vm5, %v1613_v21 }
 0x889   :  { %1547 = vmatprep.subr.bf16.mxu0 %v1616_v63 }
 0x88c   :  { %1549 = vmatpush3.bf16.msra.mxu0 %v1548_v52 }
 0x88d   :  { %1550 = vmatprep.subr.bf16.mxu0 %v1616_v63 }
 0x95a   :  { %v1007_v54 = vpop.f32.mrb[8].mxu0 }
 0x95b   :  { %v1008_v57 = vadd.f32 %v1236_v53, %v1007_v54  ;;  %v1435_v58 = vpop.f32.mrb[9].mxu0 }
 0x95d   :  { %vm1011_vm7 = vcmp.gt.f32.partialorder %v1008_v57, 0.0  ;;  %v1012_v59 = vmul.f32 0.01, %v1008_v57 }
 0x95f   :  { %v1013_v61 = vsel %vm1011_vm7, %v1008_v57, %v1012_v59 }
 0x960   :  { %1445 = vmatmul.mubr.msk.f32.vlgmr.msra.gmra.mrb[10].mxu0 %vm191_vm3, %v1013_v61 }
 0x961   :  { %1552 = vmatpush3.bf16.msra.mxu0 %v1551_v60  ;;  %1455 = vmatprep.mubr.msk.f32.mxu0 %vm1617_vm5, %v1613_v21 }
 0x962   :  { %1553 = vmatprep.subr.bf16.mxu0 %v1616_v63 }
 0x965   :  { %1555 = vmatpush3.bf16.msra.mxu0 %v1554_v1 }
 0xa33   :  { %v1094_v3 = vpop.f32.mrb[10].mxu0 }
 0xa34   :  { %v1095_v4 = vadd.f32 %v1238_v2, %v1094_v3  ;;  %v1446_v5 = vpop.f32.mrb[11].mxu0 }
 0xa36   :  { %vm1098_vm8 = vcmp.gt.f32.partialorder %v1095_v4, 0.0  ;;  %v1099_v21 = vmul.f32 0.01, %v1095_v4 }
 0xa38   :  { %v1100_v63 = vsel %vm1098_vm8, %v1095_v4, %v1099_v21 }
 0xa39   :  { %1456 = vmatmul.mubr.msk.f32.vlgmr.msra.gmra.mrb[12].mxu0 %vm191_vm3, %v1100_v63 }
 0xb0c   :  { %v1181_v7 = vpop.f32.mrb[12].mxu0 }
 0xb0d   :  { %v1182_v8 = vadd.f32 %v1240_v6, %v1181_v7  ;;  %v1457_v9 = vpop.f32.mrb[13].mxu0 }
 0xb0f   :  { %v1186_v10 = vsel %vm1185_vm9, %v1182_v8, -inf }
 0xb10   :  { %1187 = vmax.xlane.f32.xlu1 %v1186_v10 }
 0xb9d   :  { %v1188_v11 = vpop.xlane.xlu1 %1187 }
 0xb9e   :  { %v1189_v12 = vsub.f32 %v1182_v8, %v1188_v11 }
 0xba0   :  { %v1190_v13 = vmul.f32 1.442695, %v1189_v12 }
 0xba2   :  { %1584 = vpow2.f32 %v1190_v13 }
 0xbac   :  { %v1585_v14 = vpop.eup %1584 }
 0xbad   :  { %v1192_v15 = vsel %vm1185_vm9, %v1585_v14, 0.0 }
 0xbae   :  { %1193 = vadd.xlane.f32.xlu0 %v1192_v15 }
 0xc3b   :  { %v1194_v16 = vpop.xlane.xlu0 %1193 }
 0xc3c   :  { %1586 = vrcp.f32 %v1194_v16 }
 0xc46   :  { %v1587_v17 = vpop.eup %1586 }
 0xc47   :  { %v1196_v18 = vmul.f32 %v1587_v17, %v1585_v14 }
 0xc49   :  { %1197 = vst.msk [vmem:[#allocation2] sm:$0x3] %vm1185_vm9, %v1196_v18 }
 0xc4a   :  { %1599 = shalt.err (!%p1596_p4)
}
 0xc4b   :  { %s1600_s6 = scalar_lea.hbm %s2035_s23, 32 }
 0xc4c   :  { %p1601_p5 = scmp.ne.s32.totalorder %s2035_s23, %s1600_s6  ;;  %p1604_p6 = scmp.lt.u32.totalorder %s1600_s6, %s2035_s23 }
 0xc4e   :  { %p1606_p7 = pnand %p1604_p6, %p1601_p5 }
 0xc50   :  { %1609 = shalt.err (!%p1606_p7)
}
 0xc51   :  { %1207 = dma.vmem_to_hbm [thread:$0]  %s1205_s21, 32, %s2035_s23, [#allocation3]  }
 0xc52   :  { %1610 = dma.done.wait [#allocation3], 32  }
 0xc53   :  { %1611 = vsyncadd [#allocation3], 4294967264 }
 0xc54   :  { %1211 = vsyncpa [#allocation3], 1 }

</bundles_post_ra>
